<compile_context>
chip_gen: v7x
topology: tpu7x:2x2x1
jax: 0.10.0
libtpu: 0.0.40
codegen_flags: <defaults>
</compile_context>

<pallas_src>
import jax
import jax.numpy as jnp
from jax import lax
from jax.experimental import pallas as pl
from jax.experimental.pallas import tpu as pltpu

_LANE = 128


def _mlp_kernel(x_ref, w1_ref, b1_ref, w2_ref, b2_ref, w3_ref, b3_ref, o_ref):
    # x_ref: (1, tm) f32, batch on the lane axis
    # w1_ref, b1_ref: (H, 1) f32; w2_ref: (H, H) bf16; b2_ref: (H, 1) f32;
    # w3_ref: (H, 1) f32; b3_ref: (1, 1) f32
    x = x_ref[...]                                                      # (1, tm)

    # Layer 1 (input_dim == 1): outer product on the VPU, f32 (bf16 VALU not
    # guaranteed on v5e, so keep elementwise work in f32).
    h1 = jnp.maximum(w1_ref[...] * x + b1_ref[...], 0.0)               # (H, tm) f32

    # Layer 2: the only real contraction -> MXU. bf16 operands halve the MXU
    # push count; f32 accumulation; explicit DEFAULT precision avoids any
    # multi-pass (x3/x6) decomposition.
    h2 = jnp.dot(w2_ref[...], h1.astype(jnp.bfloat16),
                 preferred_element_type=jnp.float32,
                 precision=lax.Precision.DEFAULT)                       # (H, tm) f32
    h2 = jnp.maximum(h2 + b2_ref[...], 0.0)

    # Layer 3 (output_dim == 1): VPU multiply + sublane reduce, f32.
    out = jnp.sum(h2 * w3_ref[...], axis=0, keepdims=True) + b3_ref[...]  # (1, tm)
    o_ref[...] = out.astype(o_ref.dtype)


def _round_up(n, m):
    return ((n + m - 1) // m) * m


def simple_reg_net(x, params, *, tm_max=8192, target_steps=8):
    """x: (B, 1) float32. params: PyTorch-layout weights (see init_params)."""
    w1, b1, w2, b2, w3, b3 = (params[k] for k in ("w1", "b1", "w2", "b2", "w3", "b3"))
    B, in_dim = x.shape
    H = w2.shape[0]
    assert in_dim == 1 and w3.shape[1] == 1, "kernel specialized for input_dim=1, output_dim=1"

    # Batch along lanes, padded only to a lane multiple (not to a tile multiple).
    B_pad = _round_up(B, _LANE)
    # Tile size: big enough to amortize ~0.35us/step + weight re-push, but small
    # enough that the grid has >= target_steps steps (v7x: 2 TCs share the
    # "parallel" axis) and the (H, tm) activation slabs stay tiny vs VMEM.
    tm = _round_up(pl.cdiv(B_pad, target_steps), _LANE)
    tm = max(_LANE, min(tm, tm_max, B_pad))
    grid = (pl.cdiv(B_pad, tm),)

    # (B,1) -> (1,B) reshape is layout-free; pad avoids an extra HBM copy of x.
    xt = jnp.pad(x.reshape(1, B), ((0, 0), (0, B_pad - B)))

    # Pre-cast only the dot weight to bf16; everything else stays f32.
    w2_bf16 = w2.astype(jnp.bfloat16)

    const = lambda shape: pl.BlockSpec(shape, lambda i: (0, 0))  # resident across steps

    weight_bytes = (w1.size + b1.size + b2.size + w3.size + b3.size) * 4 + w2_bf16.size * 2
    cost = pl.CostEstimate(
        flops=2 * H * H * B_pad + 6 * H * B_pad,
        transcendentals=0,
        bytes_accessed=8 * B_pad + weight_bytes,
    )

    out_t = pl.pallas_call(
        _mlp_kernel,
        out_shape=jax.ShapeDtypeStruct((1, B_pad), jnp.float32),
        grid=grid,
        in_specs=[
            pl.BlockSpec((1, tm), lambda i: (0, i)),   # x tile: batch on lanes
            const(w1.shape), const(b1.shape),
            const(w2_bf16.shape), const(b2.shape),
            const(w3.shape), const(b3.shape),
        ],
        out_specs=pl.BlockSpec((1, tm), lambda i: (0, i)),
        compiler_params=pltpu.CompilerParams(
            dimension_semantics=("parallel",),
            vmem_limit_bytes=32 * 1024 * 1024,   # explicit, with headroom; safe on v7x 64 MiB
        ),
        cost_estimate=cost,
    )(xt, w1, b1, w2_bf16, b2, w3, b3)

    return out_t[0, :B].reshape(B, 1)


def init_params(key, input_dim=1, hidden_dim=64, output_dim=1):
    """PyTorch nn.Linear-style init, stored in the kernel's transposed layout."""
    assert input_dim == 1 and output_dim == 1

    def linear(k, fan_in, fan_out):
        kw, kb = jax.random.split(k)
        bound = 1.0 / jnp.sqrt(jnp.float32(fan_in))
        w = jax.random.uniform(kw, (fan_out, fan_in), jnp.float32, -bound, bound)  # (out, in)
        b = jax.random.uniform(kb, (fan_out, 1), jnp.float32, -bound, bound)       # (out, 1)
        return w, b

    k1, k2, k3 = jax.random.split(key, 3)
    w1, b1 = linear(k1, input_dim, hidden_dim)     # (H, 1), (H, 1)
    w2, b2 = linear(k2, hidden_dim, hidden_dim)    # (H, H), (H, 1)
    w3t, b3 = linear(k3, hidden_dim, output_dim)   # (1, H), (1, 1)
    return {"w1": w1, "b1": b1, "w2": w2, "b2": b2, "w3": w3t.T, "b3": b3}


def reference(x, p):
    """Reference with layer-2 precision pinned to bf16 operands / f32 accumulate
    (matching the kernel), so the comparison stays tight."""
    h1 = jnp.maximum(x @ p["w1"].T + p["b1"][:, 0], 0.0)
    h2 = jnp.dot(h1.astype(jnp.bfloat16), p["w2"].astype(jnp.bfloat16).T,
                 preferred_element_type=jnp.float32,
                 precision=lax.Precision.DEFAULT)
    h2 = jnp.maximum(h2 + p["b2"][:, 0], 0.0)
    return h2 @ p["w3"] + p["b3"][:, 0]


if __name__ == "__main__":
    key = jax.random.PRNGKey(0)
    kx, kp = jax.random.split(key)

    batch, input_dim, hidden_dim, output_dim = 8, 1, 64, 1
    x = jax.random.normal(kx, (batch, input_dim), jnp.float32)
    params = init_params(kp, input_dim, hidden_dim, output_dim)

    out = simple_reg_net(x, params)
    out = jax.block_until_ready(out)

    ref = reference(x, params)
    assert out.shape == (batch, output_dim)
    assert jnp.allclose(out, ref, atol=1e-3, rtol=1e-3), "mismatch vs reference"
    print("KERNEL_OK")
</pallas_src>

<mosaic_0001>
module attributes {stable_mosaic.version = 11 : i64} {
  func.func @_mlp_kernel(%arg0: i32, %arg1: memref<1x128xf32, #tpu.memory_space<vmem>>, %arg2: memref<64x1xf32, #tpu.memory_space<vmem>>, %arg3: memref<64x1xf32, #tpu.memory_space<vmem>>, %arg4: memref<64x64xbf16, #tpu.memory_space<vmem>>, %arg5: memref<64x1xf32, #tpu.memory_space<vmem>>, %arg6: memref<64x1xf32, #tpu.memory_space<vmem>>, %arg7: memref<1x1xf32, #tpu.memory_space<vmem>>, %arg8: memref<1x128xf32, #tpu.memory_space<vmem>>) attributes {dimension_semantics = [#tpu.dimension_semantics<parallel>], iteration_bounds = array<i64: 1>, scalar_prefetch = 0 : i64, scratch_operands = 0 : i64, tpu.core_type = #tpu.core_type<tc>, window_params = [{transform_indices = @transform_0, window_bounds = array<i64: 1, 128>}, {pipeline_mode = #tpu.pipeline_mode<synchronous>, transform_indices = @transform_1, window_bounds = array<i64: 64, 1>}, {pipeline_mode = #tpu.pipeline_mode<synchronous>, transform_indices = @transform_2, window_bounds = array<i64: 64, 1>}, {pipeline_mode = #tpu.pipeline_mode<synchronous>, transform_indices = @transform_3, window_bounds = array<i64: 64, 64>}, {pipeline_mode = #tpu.pipeline_mode<synchronous>, transform_indices = @transform_4, window_bounds = array<i64: 64, 1>}, {pipeline_mode = #tpu.pipeline_mode<synchronous>, transform_indices = @transform_5, window_bounds = array<i64: 64, 1>}, {pipeline_mode = #tpu.pipeline_mode<synchronous>, transform_indices = @transform_6, window_bounds = array<i64: 1, 1>}, {transform_indices = @transform_7, window_bounds = array<i64: 1, 128>}]} {
    %c0 = arith.constant 0 : index
    %c0_0 = arith.constant 0 : index
    %0 = vector.load %arg1[%c0, %c0_0] : memref<1x128xf32, #tpu.memory_space<vmem>>, vector<1x128xf32>
    %c0_1 = arith.constant 0 : index
    %c0_2 = arith.constant 0 : index
    %1 = vector.load %arg2[%c0_1, %c0_2] : memref<64x1xf32, #tpu.memory_space<vmem>>, vector<64x1xf32>
    %2 = vector.broadcast %1 : vector<64x1xf32> to vector<64x128xf32>
    %3 = vector.broadcast %0 : vector<1x128xf32> to vector<64x128xf32>
    %4 = arith.mulf %2, %3 : vector<64x128xf32>
    %c0_3 = arith.constant 0 : index
    %c0_4 = arith.constant 0 : index
    %5 = vector.load %arg3[%c0_3, %c0_4] : memref<64x1xf32, #tpu.memory_space<vmem>>, vector<64x1xf32>
    %6 = vector.broadcast %5 : vector<64x1xf32> to vector<64x128xf32>
    %7 = arith.addf %4, %6 : vector<64x128xf32>
    %cst = arith.constant 0.000000e+00 : f32
    %8 = vector.broadcast %cst : f32 to vector<64x128xf32>
    %9 = arith.maximumf %7, %8 : vector<64x128xf32>
    %c0_5 = arith.constant 0 : index
    %c0_6 = arith.constant 0 : index
    %10 = vector.load %arg4[%c0_5, %c0_6] : memref<64x64xbf16, #tpu.memory_space<vmem>>, vector<64x64xbf16>
    %11 = arith.truncf %9 : vector<64x128xf32> to vector<64x128xbf16>
    %cst_7 = arith.constant dense<0.000000e+00> : vector<64x128xf32>
    %12 = tpu.matmul %10, %11, %cst_7 {dimension_numbers = #tpu.dot_dimension_numbers<[1], [0], [0], [1], [0, 0, 1, 1], [], []>} : vector<64x64xbf16>, vector<64x128xbf16>, vector<64x128xf32> -> vector<64x128xf32>
    %c0_8 = arith.constant 0 : index
    %c0_9 = arith.constant 0 : index
    %13 = vector.load %arg5[%c0_8, %c0_9] : memref<64x1xf32, #tpu.memory_space<vmem>>, vector<64x1xf32>
    %14 = vector.broadcast %13 : vector<64x1xf32> to vector<64x128xf32>
    %15 = arith.addf %12, %14 : vector<64x128xf32>
    %cst_10 = arith.constant 0.000000e+00 : f32
    %16 = vector.broadcast %cst_10 : f32 to vector<64x128xf32>
    %17 = arith.maximumf %15, %16 : vector<64x128xf32>
    %c0_11 = arith.constant 0 : index
    %c0_12 = arith.constant 0 : index
    %18 = vector.load %arg6[%c0_11, %c0_12] : memref<64x1xf32, #tpu.memory_space<vmem>>, vector<64x1xf32>
    %19 = vector.broadcast %18 : vector<64x1xf32> to vector<64x128xf32>
    %20 = arith.mulf %17, %19 : vector<64x128xf32>
    %cst_13 = arith.constant dense<0.000000e+00> : vector<128xf32>
    %21 = vector.multi_reduction <add>, %20, %cst_13 [0] : vector<64x128xf32> to vector<128xf32>
    %22 = vector.shape_cast %21 : vector<128xf32> to vector<1x128xf32>
    %c0_14 = arith.constant 0 : index
    %c0_15 = arith.constant 0 : index
    %23 = vector.load %arg7[%c0_14, %c0_15] : memref<1x1xf32, #tpu.memory_space<vmem>>, vector<1x1xf32>
    %24 = vector.broadcast %23 : vector<1x1xf32> to vector<1x128xf32>
    %25 = arith.addf %22, %24 : vector<1x128xf32>
    %c0_16 = arith.constant 0 : index
    %c0_17 = arith.constant 0 : index
    %26 = vector.load %arg8[%c0_16, %c0_17] : memref<1x128xf32, #tpu.memory_space<vmem>>, vector<1x128xf32>
    tpu.vector_store %arg8[%c0_16, %c0_17], %25 {strides = array<i32>} : memref<1x128xf32, #tpu.memory_space<vmem>>, vector<1x128xf32>,
    return
  }
  func.func @transform_0(%arg0: i32) -> (i32, i32) {
    %c0_i32 = arith.constant 0 : i32
    %c0_i32_0 = arith.constant 0 : i32
    return %c0_i32, %arg0 : i32, i32
  }
  func.func @transform_1(%arg0: i32) -> (i32, i32) {
    %c0_i32 = arith.constant 0 : i32
    %c0_i32_0 = arith.constant 0 : i32
    %c0_i32_1 = arith.constant 0 : i32
    return %c0_i32, %c0_i32_0 : i32, i32
  }
  func.func @transform_2(%arg0: i32) -> (i32, i32) {
    %c0_i32 = arith.constant 0 : i32
    %c0_i32_0 = arith.constant 0 : i32
    %c0_i32_1 = arith.constant 0 : i32
    return %c0_i32, %c0_i32_0 : i32, i32
  }
  func.func @transform_3(%arg0: i32) -> (i32, i32) {
    %c0_i32 = arith.constant 0 : i32
    %c0_i32_0 = arith.constant 0 : i32
    %c0_i32_1 = arith.constant 0 : i32
    return %c0_i32, %c0_i32_0 : i32, i32
  }
  func.func @transform_4(%arg0: i32) -> (i32, i32) {
    %c0_i32 = arith.constant 0 : i32
    %c0_i32_0 = arith.constant 0 : i32
    %c0_i32_1 = arith.constant 0 : i32
    return %c0_i32, %c0_i32_0 : i32, i32
  }
  func.func @transform_5(%arg0: i32) -> (i32, i32) {
    %c0_i32 = arith.constant 0 : i32
    %c0_i32_0 = arith.constant 0 : i32
    %c0_i32_1 = arith.constant 0 : i32
    return %c0_i32, %c0_i32_0 : i32, i32
  }
  func.func @transform_6(%arg0: i32) -> (i32, i32) {
    %c0_i32 = arith.constant 0 : i32
    %c0_i32_0 = arith.constant 0 : i32
    %c0_i32_1 = arith.constant 0 : i32
    return %c0_i32, %c0_i32_0 : i32, i32
  }
  func.func @transform_7(%arg0: i32) -> (i32, i32) {
    %c0_i32 = arith.constant 0 : i32
    %c0_i32_0 = arith.constant 0 : i32
    return %c0_i32, %arg0 : i32, i32
  }
}

</mosaic_0001>

<bundles_post_ra>
// kernel: tpu_custom_call.1
= control target key start
LH: loop header
LB: loop body
LE: loop exit
PB: predicated region body
PF: predicated region fallthrough
CT: control target
= control target key end

     0   :  { %s663_s0 = inlined_call_operand.vmem [shape: f32[1,128], index: 0, kind: input, shape index: {}]   ;;  %s664_s1 = inlined_call_operand.vmem [shape: f32[64,1], index: 1, kind: input, shape index: {}]   ;;  %s665_s2 = inlined_call_operand.vmem [shape: f32[64,1], index: 2, kind: input, shape index: {}]   ;;  %s666_s3 = inlined_call_operand.vmem [shape: bf16[64,64], index: 3, kind: input, shape index: {}]   ;;  %s667_s4 = inlined_call_operand.vmem [shape: f32[64,1], index: 4, kind: input, shape index: {}]   ;;  %s668_s5 = inlined_call_operand.vmem [shape: f32[64,1], index: 5, kind: input, shape index: {}]   ;;  %s669_s6 = inlined_call_operand.<no memory space> [shape: f32[1,1], index: 6, kind: input, shape index: {}]   ;;  %s670_s7 = inlined_call_operand.hbm [shape: f32[1,128], index: 7, kind: output, shape index: {}]  }
   0x1   :  { %v12_v0 = vstv %s669_s6 }
   0x2   :  { %13 = vst [vmem:[#allocation2] sm:$0x1] %v12_v0 }
   0x3   :  { %v93_v1 = vld [vmem:[%s665_s2] sm:$0xff]  ;;  %v491_v3 = vmov 0   ;;  %v94_v4 = vld [vmem:[%s665_s2 + $0x8] sm:$0xff]  ;;  %v34_v6 = vld [vmem:[%s664_s1 + $0x18] sm:$0xff] }
   0x4   :  { %v31_v2 = vld [vmem:[%s664_s1] sm:$0xff]  ;;  %462 = vset.pattern.permute.xlu1 %v491_v3  ;;  %461 = vset.pattern.permute.xlu0 %v491_v3  ;;  %v32_v5 = vld [vmem:[%s664_s1 + $0x8] sm:$0xff]  ;;  %v33_v7 = vld [vmem:[%s664_s1 + $0x10] sm:$0xff] }
   0x5   :  { %103 = vperm.xlu1 %462, %v93_v1   ;;  %41 = vperm.xlu0 %461, %v31_v2   ;;  %v96_v8 = vld [vmem:[%s665_s2 + $0x18] sm:$0xff]  ;;  %v95_v9 = vld [vmem:[%s665_s2 + $0x10] sm:$0xff] }
   0x9   :  { %108 = vperm.xlu1 %462, %v94_v4   ;;  %46 = vperm.xlu0 %461, %v32_v5  }
   0xd   :  { %56 = vperm.xlu1 %462, %v34_v6   ;;  %51 = vperm.xlu0 %461, %v33_v7  }
  0x11   :  { %118 = vperm.xlu1 %462, %v96_v8   ;;  %113 = vperm.xlu0 %461, %v95_v9  }
  0x12   :  { %14 = vsyncpa [#allocation4], 0  ;;  %v36_v10 = vld [vmem:[%s664_s1 + $0x28] sm:$0xff]  ;;  %v35_v11 = vld [vmem:[%s664_s1 + $0x20] sm:$0xff]  ;;  %vm237_vm0 = vcmask 523264  }
  0x13   :  { %v98_v12 = vld [vmem:[%s665_s2 + $0x28] sm:$0xff]  ;;  %v97_v13 = vld [vmem:[%s665_s2 + $0x20] sm:$0xff]  ;;  %v38_v14 = vld [vmem:[%s664_s1 + $0x38] sm:$0xff] }
  0x14   :  { %v37_v15 = vld [vmem:[%s664_s1 + $0x30] sm:$0xff]  ;;  %v100_v16 = vld [vmem:[%s665_s2 + $0x38] sm:$0xff]  ;;  %v170_v18 = vld [vmem:[%s667_s4 + $0x8] sm:$0xff] }
  0x15   :  { %66 = vperm.xlu1 %462, %v36_v10   ;;  %61 = vperm.xlu0 %461, %v35_v11   ;;  %v99_v17 = vld [vmem:[%s665_s2 + $0x30] sm:$0xff]  ;;  %v169_v19 = vld [vmem:[%s667_s4] sm:$0xff]  ;;  %v172_v20 = vld [vmem:[%s667_s4 + $0x18] sm:$0xff] }
  0x16   :  { %v171_v21 = vld [vmem:[%s667_s4 + $0x10] sm:$0xff]  ;;  %v463_v22 = vld [vmem:[%s666_s3] sm:$0xff]   ;;  %v324_v24 = vld [vmem:[%s668_s5 + $0x8] sm:$0xff] }
  0x17   :  { %v464_v23 = vld [vmem:[%s666_s3 + $0x10] sm:$0xff]   ;;  %v323_v25 = vld [vmem:[%s668_s5] sm:$0xff]  ;;  %443 = vmatprep.mubr.msk.bf16.mxu0 %vm237_vm0, %v463_v22  ;;  %v326_v28 = vld [vmem:[%s668_s5 + $0x18] sm:$0xff] }
  0x18   :  { %447 = vmatprep.mubr.msk.bf16.mxu1 %vm237_vm0, %v464_v23  ;;  %v325_v26 = vld [vmem:[%s668_s5 + $0x10] sm:$0xff]  ;;  %v173_v27 = vld [vmem:[%s667_s4 + $0x20] sm:$0xff]  ;;  %v174_v29 = vld [vmem:[%s667_s4 + $0x28] sm:$0xff] }
  0x19   :  { %128 = vperm.xlu1 %462, %v98_v12   ;;  %123 = vperm.xlu0 %461, %v97_v13   ;;  %v327_v30 = vld [vmem:[%s668_s5 + $0x20] sm:$0xff]  ;;  %v175_v31 = vld [vmem:[%s667_s4 + $0x30] sm:$0xff]  ;;  %v328_v32 = vld [vmem:[%s668_s5 + $0x28] sm:$0xff] }
  0x1a   :  { %v176_v33 = vld [vmem:[%s667_s4 + $0x38] sm:$0xff]  ;;  %v329_v35 = vld [vmem:[%s668_s5 + $0x30] sm:$0xff]  ;;  %v392_v36 = vld [vmem:[#allocation2] sm:$0x1] }
  0x1b   :  { %v330_v34 = vld [vmem:[%s668_s5 + $0x38] sm:$0xff]  ;;  %v418_v37 = vld [vmem:[%s663_s0] ss:$0 sm:$0xff] }
  0x1d   :  { %76 = vperm.xlu1 %462, %v38_v14   ;;  %71 = vperm.xlu0 %461, %v37_v15  }
  0x21   :  { %138 = vperm.xlu1 %462, %v100_v16   ;;  %133 = vperm.xlu0 %461, %v99_v17  }
  0x25   :  { %184 = vperm.xlu1 %462, %v170_v18   ;;  %179 = vperm.xlu0 %461, %v169_v19   ;;  %v465_v18 = vld [vmem:[%s666_s3 + $0x8] sm:$0xff]   ;;  %v466_v19 = vld [vmem:[%s666_s3 + $0x18] sm:$0xff]   ;;  %s492_s3 = smov [#allocation3]  }
  0x26   :  { %s410_s21 = sshll.u32 %s492_s3, 4  ;;  %s411_s21 = int_to_ptr.vmem [resolvable:$true] %s410_s21 }
  0x27   :  { %s467_s22 = scalar_lea.vmem %s411_s21, 16  ;;  %s471_s23 = scalar_lea.vmem %s411_s21, 32 }
  0x28   :  { %p468_p0 = scmp.ne.s32.totalorder %s411_s21, %s467_s22  ;;  %p472_p1 = scmp.lt.s32.totalorder %s411_s21, %s411_s21 }
  0x29   :  { %194 = vperm.xlu1 %462, %v172_v20   ;;  %189 = vperm.xlu0 %461, %v171_v21   ;;  %p473_p2 = scmp.lt.s32.totalorder %s471_s23, %s467_s22 }
  0x2b   :  { %p474_p3 = por %p473_p2, %p472_p1 }
  0x2d   :  { %338 = vperm.xlu1 %462, %v324_v24   ;;  %333 = vperm.xlu0 %461, %v323_v25   ;;  %p475_p4 = pnand %p474_p3, %p468_p0 }
  0x31   :  { %343 = vperm.xlu1 %462, %v325_v26   ;;  %199 = vperm.xlu0 %461, %v173_v27  }
  0x35   :  { %348 = vperm.xlu1 %462, %v326_v28   ;;  %204 = vperm.xlu0 %461, %v174_v29  }
  0x39   :  { %353 = vperm.xlu1 %462, %v327_v30   ;;  %209 = vperm.xlu0 %461, %v175_v31  }
  0x3d   :  { %358 = vperm.xlu1 %462, %v328_v32   ;;  %214 = vperm.xlu0 %461, %v176_v33  }
  0x41   :  { %368 = vperm.xlu1 %462, %v330_v34   ;;  %363 = vperm.xlu0 %461, %v329_v35  }
  0x45   :  { %395 = vperm.xlu0 %461, %v392_v36  }
  0x84   :  { %v104_v38 = vpop.permute.xlu1 %103  ;;  %v42_v39 = vpop.permute.xlu0 %41 }
  0x85   :  { %v85_v40 = vmul.f32 %v418_v37, %v42_v39 }
  0x87   :  { %v141_v43 = vadd.f32 %v104_v38, %v85_v40 }
  0x88   :  { %v109_v41 = vpop.permute.xlu1 %108  ;;  %v47_v42 = vpop.permute.xlu0 %46 }
  0x89   :  { %v86_v44 = vmul.f32 %v418_v37, %v47_v42  ;;  %v149_v48 = vmax.f32 %v141_v43, 0.0 }
  0x8b   :  { %v142_v45 = vadd.f32 %v109_v41, %v86_v44 }
  0x8c   :  { %v57_v46 = vpop.permute.xlu1 %56  ;;  %v52_v47 = vpop.permute.xlu0 %51 }
  0x8d   :  { %v150_v49 = vmax.f32 %v142_v45, 0.0  ;;  %v88_v51 = vmul.f32 %v418_v37, %v57_v46  ;;  %v87_v52 = vmul.f32 %v418_v37, %v52_v47 }
  0x8f   :  { %v165_v50 = vpack.c.bf16 %v150_v49, %v149_v48 }
  0x90   :  { %v119_v53 = vpop.permute.xlu1 %118  ;;  %v114_v54 = vpop.permute.xlu0 %113 }
  0x91   :  { %v144_v55 = vadd.f32 %v119_v53, %v88_v51  ;;  %v143_v56 = vadd.f32 %v114_v54, %v87_v52  ;;  %435 = vmatprep.subr.bf16.mxu0 %v165_v50  ;;  %451 = vmatprep.subr.bf16.mxu1 %v165_v50 }
  0x92   :  { %436 = vmatpush3.bf16.msra.mxu0 %v165_v50  ;;  %455 = vmatpush3.bf16.msra.mxu1 %v165_v50 }
  0x93   :  { %v152_v57 = vmax.f32 %v144_v55, 0.0  ;;  %v151_v58 = vmax.f32 %v143_v56, 0.0 }
  0x94   :  { %v67_v59 = vpop.permute.xlu1 %66  ;;  %v62_v60 = vpop.permute.xlu0 %61 }
  0x95   :  { %v166_v61 = vpack.c.bf16 %v152_v57, %v151_v58  ;;  %v90_v62 = vmul.f32 %v418_v37, %v67_v59  ;;  %v89_v63 = vmul.f32 %v418_v37, %v62_v60 }
  0x97   :  { %437 = vmatprep.subr.bf16.mxu0 %v166_v61  ;;  %452 = vmatprep.subr.bf16.mxu1 %v166_v61 }
  0x98   :  { %v129_v0 = vpop.permute.xlu1 %128  ;;  %v124_v1 = vpop.permute.xlu0 %123  ;;  %438 = vmatpush3.bf16.msra.mxu0 %v166_v61  ;;  %456 = vmatpush3.bf16.msra.mxu1 %v166_v61 }
  0x99   :  { %v146_v2 = vadd.f32 %v129_v0, %v90_v62  ;;  %v145_v3 = vadd.f32 %v124_v1, %v89_v63 }
  0x9b   :  { %v154_v4 = vmax.f32 %v146_v2, 0.0  ;;  %v153_v5 = vmax.f32 %v145_v3, 0.0 }
  0x9c   :  { %v77_v6 = vpop.permute.xlu1 %76  ;;  %v72_v7 = vpop.permute.xlu0 %71 }
  0x9d   :  { %v167_v8 = vpack.c.bf16 %v154_v4, %v153_v5  ;;  %v92_v9 = vmul.f32 %v418_v37, %v77_v6  ;;  %v91_v10 = vmul.f32 %v418_v37, %v72_v7 }
  0x9f   :  { %439 = vmatprep.subr.bf16.mxu0 %v167_v8  ;;  %453 = vmatprep.subr.bf16.mxu1 %v167_v8 }
  0xa0   :  { %v139_v11 = vpop.permute.xlu1 %138  ;;  %v134_v12 = vpop.permute.xlu0 %133  ;;  %440 = vmatpush3.bf16.msra.mxu0 %v167_v8  ;;  %457 = vmatpush3.bf16.msra.mxu1 %v167_v8 }
  0xa1   :  { %v148_v13 = vadd.f32 %v139_v11, %v92_v9  ;;  %v147_v14 = vadd.f32 %v134_v12, %v91_v10  ;;  %v398_v10 = vlaneseq }
  0xa3   :  { %v156_v15 = vmax.f32 %v148_v13, 0.0  ;;  %v155_v16 = vmax.f32 %v147_v14, 0.0  ;;  %v399_v13 = vshrl.u32 %v398_v10, 7 }
  0xa4   :  { %v185_v20 = vpop.permute.xlu1 %184  ;;  %v180_v21 = vpop.permute.xlu0 %179 }
  0xa5   :  { %v168_v17 = vpack.c.bf16 %v156_v15, %v155_v16  ;;  %v400_v16 = vsub.s32 0, %v399_v13 }
  0xa7   :  { %441 = vmatprep.subr.bf16.mxu0 %v168_v17  ;;  %454 = vmatprep.subr.bf16.mxu1 %v168_v17 }
  0xa8   :  { %442 = vmatpush3.bf16.msra.mxu0 %v168_v17  ;;  %458 = vmatpush3.bf16.msra.mxu1 %v168_v17  ;;  %v195_v22 = vpop.permute.xlu1 %194  ;;  %v190_v23 = vpop.permute.xlu0 %189 }
  0xab   :  { %444 = vmatmul.mubr.msk.bf16.vlgmr.msra.gmra.mrb[0].mxu0 %vm237_vm0, %v465_v18  ;;  %448 = vmatmul.mubr.msk.bf16.vlgmr.msra.gmra.mrb[0].mxu1 %vm237_vm0, %v466_v19 }
  0xac   :  { %v339_v24 = vpop.permute.xlu1 %338  ;;  %v334_v25 = vpop.permute.xlu0 %333 }
  0xb0   :  { %v344_v26 = vpop.permute.xlu1 %343  ;;  %v200_v27 = vpop.permute.xlu0 %199 }
  0xb4   :  { %v349_v28 = vpop.permute.xlu1 %348  ;;  %v205_v29 = vpop.permute.xlu0 %204 }
  0xb8   :  { %v210_v43 = vpop.permute.xlu0 %209  ;;  %v354_v47 = vpop.permute.xlu1 %353 }
  0xbc   :  { %v215_v56 = vpop.permute.xlu0 %214  ;;  %v359_v61 = vpop.permute.xlu1 %358 }
  0xc0   :  { %v364_v4 = vpop.permute.xlu0 %363  ;;  %v369_v7 = vpop.permute.xlu1 %368 }
  0xc4   :  { %v396_v18 = vpop.permute.xlu0 %395 }
 0x17e   :  { %v445_v30 = vpop.f32.mrb[0].mxu0  ;;  %v449_v31 = vpop.f32.mrb[0].mxu1 }
 0x17f   :  { %v284_v32 = vpop.f32.mrb[1].mxu0  ;;  %v300_v33 = vpop.f32.mrb[1].mxu1  ;;  %v293_v34 = vadd.f32 %v445_v30, %v190_v23  ;;  %v309_v53 = vadd.f32 %v449_v31, %v210_v43 }
 0x180   :  { %v285_v35 = vadd.f32 %v284_v32, %v180_v21  ;;  %v446_v36 = vpop.f32.mrb[2].mxu0  ;;  %v450_v37 = vpop.f32.mrb[2].mxu1  ;;  %v301_v45 = vadd.f32 %v300_v33, %v200_v27 }
 0x181   :  { %v287_v38 = vpop.f32.mrb[3].mxu0  ;;  %v303_v39 = vpop.f32.mrb[3].mxu1  ;;  %v296_v41 = vadd.f32 %v446_v36, %v195_v22  ;;  %v317_v44 = vmax.f32 %v293_v34, 0.0  ;;  %v312_v58 = vadd.f32 %v450_v37, %v215_v56  ;;  %v321_v62 = vmax.f32 %v309_v53, 0.0 }
 0x182   :  { %v315_v40 = vmax.f32 %v285_v35, 0.0  ;;  %v288_v42 = vadd.f32 %v287_v38, %v185_v20  ;;  %v304_v51 = vadd.f32 %v303_v39, %v205_v29  ;;  %v319_v54 = vmax.f32 %v301_v45, 0.0 }
 0x183   :  { %v318_v49 = vmax.f32 %v296_v41, 0.0  ;;  %v373_v52 = vmul.f32 %v344_v26, %v317_v44  ;;  %v322_v1 = vmax.f32 %v312_v58, 0.0  ;;  %v377_v5 = vmul.f32 %v364_v4, %v321_v62 }
 0x184   :  { %v316_v46 = vmax.f32 %v288_v42, 0.0  ;;  %v371_v48 = vmul.f32 %v334_v25, %v315_v40  ;;  %v320_v60 = vmax.f32 %v304_v51, 0.0  ;;  %v375_v63 = vmul.f32 %v354_v47, %v319_v54 }
 0x185   :  { %v374_v57 = vmul.f32 %v349_v28, %v318_v49  ;;  %v378_v8 = vmul.f32 %v369_v7, %v322_v1  ;;  %v401_v20 = vrot.slane %v396_v18, %v400_v16 }
 0x186   :  { %v372_v50 = vmul.f32 %v339_v24, %v316_v46  ;;  %v376_v2 = vmul.f32 %v359_v61, %v320_v60 }
 0x188   :  { %v379_v55 = vadd.f32 %v372_v50, %v371_v48 }
 0x18a   :  { %v380_v59 = vadd.f32 %v379_v55, %v373_v52 }
 0x18c   :  { %v381_v0 = vadd.f32 %v380_v59, %v374_v57 }
 0x18e   :  { %v382_v3 = vadd.f32 %v381_v0, %v375_v63 }
 0x190   :  { %v383_v6 = vadd.f32 %v382_v3, %v376_v2 }
 0x192   :  { %v384_v9 = vadd.f32 %v383_v6, %v377_v5 }
 0x194   :  { %v385_v11 = vadd.f32 %v384_v9, %v378_v8 }
 0x196   :  { %v386_v12 = vrot.slane %v385_v11, 4 }
 0x198   :  { %v387_v14 = vadd.f32 %v386_v12, %v385_v11 }
 0x19a   :  { %v388_v15 = vrot.slane %v387_v14, 2 }
 0x19c   :  { %v389_v17 = vadd.f32 %v388_v15, %v387_v14 }
 0x19e   :  { %v390_v19 = vrot.slane %v389_v17, 1 }
 0x1a0   :  { %v391_v21 = vadd.f32 %v390_v19, %v389_v17 }
 0x1a2   :  { %v402_v22 = vadd.f32 %v401_v20, %v391_v21 }
 0x1a4   :  { %403 = vst [vmem:[#allocation3] sm:$0x1] %v402_v22 }
 0x1a5   :  { %478 = shalt.err (!%p475_p4)
}
 0x1a6   :  { %s479_s26 = scalar_lea.hbm %s670_s7, 16 }
 0x1a7   :  { %p480_p5 = scmp.ne.s32.totalorder %s670_s7, %s479_s26  ;;  %p483_p6 = scmp.lt.u32.totalorder %s479_s26, %s670_s7 }
 0x1a9   :  { %p485_p7 = pnand %p483_p6, %p480_p5 }
 0x1ab   :  { %488 = shalt.err (!%p485_p7)
}
 0x1ac   :  { %413 = dma.vmem_to_hbm [thread:$0]  %s411_s21, 16, %s670_s7, [#allocation4]  }
 0x1ad   :  { %489 = dma.done.wait [#allocation4], 16  }
 0x1ae   :  { %490 = vsyncadd [#allocation4], 4294967280 }
 0x1af   :  { %417 = vsyncpa [#allocation4], 1 }

</bundles_post_ra>
